<compile_context>
chip_gen: v6e
topology: v6e:2x2x1
jax: 0.10.0
libtpu: 0.0.40
codegen_flags: <defaults>
</compile_context>

<pallas_src>
import functools

import jax
import jax.numpy as jnp
from jax import lax
from jax.experimental import pallas as pl
from jax.experimental.pallas import tpu as pltpu

_LANES = 128
_SUBLANES = 8
# Per-input, per-pipeline-buffer block budget for the tiled path.
# 2 MiB/input/buffer -> ~8 MiB live with 2 inputs x 2 buffers.
_TILE_BYTES = 2 * 1024 * 1024
# Single full-extent block budget per input: 4 MiB -> <=16 MiB live (buffered).
_SINGLE_BLOCK_BYTES = 4 * 1024 * 1024
_VMEM_LIMIT_BYTES = 32 * 1024 * 1024


def _l1_sum_kernel(x_ref, y_ref, out_ref, acc_ref, *, rows, tile_rows,
                   blocks_per_shard, needs_mask):
    """Accumulate sum(|x - y|) into an (8,128) scratch; reduce once per shard."""
    shard = pl.program_id(0)
    step = pl.program_id(1)

    @pl.when(step == 0)
    def _():
        acc_ref[...] = jnp.zeros_like(acc_ref)

    # |x - y| in the native dtype (bf16 stays on the bf16 VPU path on v6e/v7x),
    # widened to f32 only for accumulation.
    d = jnp.abs(x_ref[...] - y_ref[...]).astype(jnp.float32)

    def _fold(v):
        # (tile_rows,128) -> (tile_rows/8, 8, 128) is sublane-exact (no relayout).
        return jnp.sum(v.reshape(tile_rows // _SUBLANES, _SUBLANES, _LANES), axis=0)

    if needs_mask:
        # Logical block index.  The index_map clamps out-of-range blocks to a
        # valid one; the mask below zeroes their contribution, so any data (even
        # garbage from a ragged DMA) is selected away before accumulation.
        block_idx = shard * blocks_per_shard + step
        valid_rows = rows - block_idx * tile_rows  # traced scalar

        @pl.when(valid_rows >= tile_rows)  # full interior block: no mask cost
        def _():
            acc_ref[...] += _fold(d)

        @pl.when(valid_rows < tile_rows)   # ragged tail / clamped OOB block
        def _():
            row_idx = lax.broadcasted_iota(jnp.int32, (tile_rows, _LANES), 0)
            acc_ref[...] += _fold(jnp.where(row_idx < valid_rows, d, 0.0))
    else:
        acc_ref[...] += _fold(d)

    @pl.when(step == pl.num_programs(1) - 1)
    def _():
        # Single cross-sublane/lane reduce, once per shard.
        out_ref[...] = jnp.sum(acc_ref[...]).reshape(1, 1, 1)


def l1_loss(disp, target):
    assert disp.shape == target.shape, "F.l1_loss with default args requires equal shapes"
    out_dtype = jnp.promote_types(disp.dtype, target.dtype)
    n = disp.size

    x = disp.reshape(-1).astype(out_dtype)
    y = target.reshape(-1).astype(out_dtype)

    itemsize = jnp.dtype(out_dtype).itemsize
    # Constant per-step DMA bytes across dtypes (bf16 doubles the row count);
    # caps are multiples of 8 (and 16 for packed dtypes) by construction.
    tile_rows_cap = max(_SUBLANES, _TILE_BYTES // (_LANES * itemsize))
    single_block_rows_cap = max(_SUBLANES, _SINGLE_BLOCK_BYTES // (_LANES * itemsize))

    # Pad only up to a whole (8,128) vreg; zeros contribute |0-0| = 0 and the
    # mean divides by the true n.  This is a no-op whenever n % 1024 == 0.
    # TODO(synk): for very large inputs with n % 1024 != 0 this pad is an extra
    # HBM pass; handle the sub-1024 tail with a tiny plain-JAX reduction instead.
    chunk = _SUBLANES * _LANES
    padded_n = pl.cdiv(n, chunk) * chunk
    if padded_n != n:
        x = jnp.pad(x, (0, padded_n - n))
        y = jnp.pad(y, (0, padded_n - n))

    rows = padded_n // _LANES
    x2 = x.reshape(rows, _LANES)  # metadata-only reshape, no HBM traffic
    y2 = y.reshape(rows, _LANES)

    if rows <= single_block_rows_cap:
        # One full-extent block: one DMA per input, no grid/pipeline overhead.
        tile_rows = rows
        num_blocks = 1
        num_shards = 1
    else:
        tile_rows = tile_rows_cap
        num_blocks = pl.cdiv(rows, tile_rows)
        # Leading "parallel" axis lets v7x's two TensorCores split the stream;
        # on the single-core v5e/v6e it simply runs serially.
        num_shards = 2 if num_blocks >= 2 else 1

    blocks_per_shard = pl.cdiv(num_blocks, num_shards)
    needs_mask = (num_shards * blocks_per_shard * tile_rows) != rows

    if num_shards * blocks_per_shard == num_blocks:
        def in_map(c, i):
            return (c * blocks_per_shard + i, 0)
    else:
        # Clamp logical blocks past the end onto a valid block; their
        # contribution is zeroed by the in-kernel mask.
        def in_map(c, i):
            return (jnp.minimum(c * blocks_per_shard + i, num_blocks - 1), 0)

    kernel = functools.partial(
        _l1_sum_kernel,
        rows=rows,
        tile_rows=tile_rows,
        blocks_per_shard=blocks_per_shard,
        needs_mask=needs_mask,
    )

    bytes_accessed = 2 * x2.size * itemsize + num_shards * 4
    partials = pl.pallas_call(
        kernel,
        out_shape=jax.ShapeDtypeStruct((num_shards, 1, 1), jnp.float32),
        grid_spec=pltpu.PrefetchScalarGridSpec(
            num_scalar_prefetch=0,
            grid=(num_shards, blocks_per_shard),
            in_specs=[
                pl.BlockSpec((tile_rows, _LANES), in_map),
                pl.BlockSpec((tile_rows, _LANES), in_map),
            ],
            # Same output block across the reduction axis -> resident partial.
            out_specs=pl.BlockSpec((1, 1, 1), lambda c, i: (c, 0, 0)),
            scratch_shapes=[pltpu.VMEM((_SUBLANES, _LANES), jnp.float32)],
        ),
        compiler_params=pltpu.CompilerParams(
            dimension_semantics=("parallel", "arbitrary"),
            vmem_limit_bytes=_VMEM_LIMIT_BYTES,
        ),
        cost_estimate=pl.CostEstimate(
            flops=2 * n, transcendentals=0, bytes_accessed=bytes_accessed),
    )(x2, y2)

    total = jnp.sum(partials)
    # torch.nn.L1Loss returns the (promoted) input dtype; accumulate in f32.
    return (total / jnp.float32(n)).astype(out_dtype)


if __name__ == "__main__":
    key = jax.random.PRNGKey(0)

    # 1) Small shapes consistent with a disparity-map loss: batch=2, channels=4, H=W=16.
    k1, k2 = jax.random.split(key)
    disp = jax.random.normal(k1, (2, 4, 16, 16), dtype=jnp.float32)
    target = jax.random.normal(k2, (2, 4, 16, 16), dtype=jnp.float32)
    loss = l1_loss(disp, target)
    jax.block_until_ready(loss)
    ref = jnp.mean(jnp.abs(disp - target))
    assert jnp.allclose(loss, ref, rtol=1e-6, atol=1e-6), (loss, ref)

    # 2) Larger input to exercise the tiled / sharded / masked-tail path.
    k3, k4 = jax.random.split(jax.random.PRNGKey(1))
    a = jax.random.normal(k3, (2, 4, 384, 384), dtype=jnp.float32)
    b = jax.random.normal(k4, (2, 4, 384, 384), dtype=jnp.float32)
    loss2 = l1_loss(a, b)
    jax.block_until_ready(loss2)
    ref2 = jnp.mean(jnp.abs(a - b))
    assert jnp.allclose(loss2, ref2, rtol=1e-4, atol=1e-5), (loss2, ref2)

    # 3) Unaligned element count to exercise the small padded path.
    k5, k6 = jax.random.split(jax.random.PRNGKey(2))
    c = jax.random.normal(k5, (3, 5, 7), dtype=jnp.float32)
    d = jax.random.normal(k6, (3, 5, 7), dtype=jnp.float32)
    loss3 = l1_loss(c, d)
    jax.block_until_ready(loss3)
    ref3 = jnp.mean(jnp.abs(c - d))
    assert jnp.allclose(loss3, ref3, rtol=1e-6, atol=1e-6), (loss3, ref3)

    print("KERNEL_OK")
</pallas_src>

<mosaic_0001>
module attributes {stable_mosaic.version = 11 : i64} {
  func.func @_l1_sum_kernel(%arg0: i32, %arg1: i32, %arg2: memref<16x128xf32, #tpu.memory_space<vmem>>, %arg3: memref<16x128xf32, #tpu.memory_space<vmem>>, %arg4: memref<1x1x1xf32, #tpu.memory_space<vmem>>, %arg5: memref<8x128xf32, #tpu.memory_space<vmem>>) attributes {dimension_semantics = [#tpu.dimension_semantics<parallel>, #tpu.dimension_semantics<arbitrary>], iteration_bounds = array<i64: 1, 1>, scalar_prefetch = 0 : i64, scratch_operands = 1 : i64, tpu.core_type = #tpu.core_type<tc>, window_params = [{transform_indices = @transform_0, window_bounds = array<i64: 16, 128>}, {transform_indices = @transform_1, window_bounds = array<i64: 16, 128>}, {transform_indices = @transform_2, window_bounds = array<i64: 1, 1, 1>}]} {
    %c0_i32 = arith.constant 0 : i32
    %0 = arith.cmpi eq, %arg1, %c0_i32 : i32
    %1 = arith.extui %0 : i1 to i32
    %c0_i32_0 = arith.constant 0 : i32
    %2 = arith.cmpi ne, %1, %c0_i32_0 : i32
    scf.if %2 {
      %cst_10 = arith.constant 0.000000e+00 : f32
      %15 = vector.broadcast %cst_10 : f32 to vector<8x128xf32>
      %c0_11 = arith.constant 0 : index
      %c0_12 = arith.constant 0 : index
      %16 = vector.load %arg5[%c0_11, %c0_12] : memref<8x128xf32, #tpu.memory_space<vmem>>, vector<8x128xf32>
      tpu.vector_store %arg5[%c0_11, %c0_12], %15 {strides = array<i32>} : memref<8x128xf32, #tpu.memory_space<vmem>>, vector<8x128xf32>,
    } else {
    }
    %c0 = arith.constant 0 : index
    %c0_1 = arith.constant 0 : index
    %3 = vector.load %arg2[%c0, %c0_1] : memref<16x128xf32, #tpu.memory_space<vmem>>, vector<16x128xf32>
    %c0_2 = arith.constant 0 : index
    %c0_3 = arith.constant 0 : index
    %4 = vector.load %arg3[%c0_2, %c0_3] : memref<16x128xf32, #tpu.memory_space<vmem>>, vector<16x128xf32>
    %5 = arith.subf %3, %4 : vector<16x128xf32>
    %6 = math.absf %5 : vector<16x128xf32>
    %c0_4 = arith.constant 0 : index
    %c0_5 = arith.constant 0 : index
    %7 = vector.load %arg5[%c0_4, %c0_5] : memref<8x128xf32, #tpu.memory_space<vmem>>, vector<8x128xf32>
    %8 = vector.shape_cast %6 : vector<16x128xf32> to vector<2x8x128xf32>
    %cst = arith.constant dense<0.000000e+00> : vector<8x128xf32>
    %9 = vector.multi_reduction <add>, %8, %cst [0] : vector<2x8x128xf32> to vector<8x128xf32>
    %10 = arith.addf %7, %9 : vector<8x128xf32>
    %c0_6 = arith.constant 0 : index
    %c0_7 = arith.constant 0 : index
    %11 = vector.load %arg5[%c0_6, %c0_7] : memref<8x128xf32, #tpu.memory_space<vmem>>, vector<8x128xf32>
    tpu.vector_store %arg5[%c0_6, %c0_7], %10 {strides = array<i32>} : memref<8x128xf32, #tpu.memory_space<vmem>>, vector<8x128xf32>,
    %c0_i32_8 = arith.constant 0 : i32
    %12 = arith.cmpi eq, %arg1, %c0_i32_8 : i32
    %13 = arith.extui %12 : i1 to i32
    %c0_i32_9 = arith.constant 0 : i32
    %14 = arith.cmpi ne, %13, %c0_i32_9 : i32
    scf.if %14 {
      %c0_10 = arith.constant 0 : index
      %c0_11 = arith.constant 0 : index
      %15 = vector.load %arg5[%c0_10, %c0_11] : memref<8x128xf32, #tpu.memory_space<vmem>>, vector<8x128xf32>
      %16 = vector.shape_cast %15 : vector<8x128xf32> to vector<1x8x128xf32>
      %cst_12 = arith.constant dense<0.000000e+00> : vector<1xf32>
      %17 = vector.multi_reduction <add>, %16, %cst_12 [1, 2] : vector<1x8x128xf32> to vector<1xf32>
      %18 = vector.shape_cast %17 : vector<1xf32> to vector<1x1x1xf32>
      %19 = vector.extract %18[0, 0, 0] : f32 from vector<1x1x1xf32>
      %20 = vector.broadcast %19 : f32 to vector<1x1x1xf32>
      %c0_13 = arith.constant 0 : index
      %c0_14 = arith.constant 0 : index
      %c0_15 = arith.constant 0 : index
      %21 = vector.load %arg4[%c0_13, %c0_14, %c0_15] : memref<1x1x1xf32, #tpu.memory_space<vmem>>, vector<1x1x1xf32>
      tpu.vector_store %arg4[%c0_13, %c0_14, %c0_15], %20 {strides = array<i32>} : memref<1x1x1xf32, #tpu.memory_space<vmem>>, vector<1x1x1xf32>,
    } else {
    }
    return
  }
  func.func @transform_0(%arg0: i32, %arg1: i32) -> (i32, i32) {
    %c1_i32 = arith.constant 1 : i32
    %0 = arith.muli %arg0, %c1_i32 : i32
    %1 = arith.addi %0, %arg1 : i32
    %c0_i32 = arith.constant 0 : i32
    %c0_i32_0 = arith.constant 0 : i32
    return %1, %c0_i32 : i32, i32
  }
  func.func @transform_1(%arg0: i32, %arg1: i32) -> (i32, i32) {
    %c1_i32 = arith.constant 1 : i32
    %0 = arith.muli %arg0, %c1_i32 : i32
    %1 = arith.addi %0, %arg1 : i32
    %c0_i32 = arith.constant 0 : i32
    %c0_i32_0 = arith.constant 0 : i32
    return %1, %c0_i32 : i32, i32
  }
  func.func @transform_2(%arg0: i32, %arg1: i32) -> (i32, i32, i32) {
    %c0_i32 = arith.constant 0 : i32
    %c0_i32_0 = arith.constant 0 : i32
    %c0_i32_1 = arith.constant 0 : i32
    return %arg0, %c0_i32, %c0_i32_0 : i32, i32, i32
  }
}

</mosaic_0001>

<bundles_post_ra>
// kernel: tpu_custom_call.1
= control target key start
LH: loop header
LB: loop body
LE: loop exit
PB: predicated region body
PF: predicated region fallthrough
CT: control target
= control target key end

     0   :  { %7 = vsyncpa [#allocation4], 0  ;;  %s203_s0 = inlined_call_operand.hbm [shape: f32[16,128], index: 0, kind: input, shape index: {}]   ;;  %s204_s1 = inlined_call_operand.hbm [shape: f32[16,128], index: 1, kind: input, shape index: {}]   ;;  %s205_s2 = inlined_call_operand.hbm [shape: f32[1,1,1], index: 2, kind: output, shape index: {}]  }
   0x1   :  { %8 = vsyncpa [#allocation7], 0 }
   0x2   :  { %9 = vsyncpa [#allocation5], 0  ;;  %s174_s9 = smov [#allocation3]  }
   0x3   :  { %s19_s10 = sshll.u32 %s174_s9, 4  ;;  %s20_s10 = int_to_ptr.vmem [resolvable:$true] %s19_s10 }
   0x4   :  { %s116_s11 = scalar_lea.vmem %s20_s10, 256  ;;  %p121_p1 = scmp.lt.s32.totalorder %s20_s10, %s20_s10 }
   0x5   :  { %p117_p0 = scmp.ne.s32.totalorder %s20_s10, %s116_s11  ;;  %p122_p2 = scmp.lt.s32.totalorder %s116_s11, %s116_s11 }
   0x7   :  { %p123_p3 = por %p122_p2, %p121_p1 }
   0x9   :  { %p124_p4 = pnand %p123_p3, %p117_p0 }
   0xb   :  { %127 = shalt.err (!%p124_p4)
}
   0xc   :  { %s175_s12 = smov 128   ;;  %s176_s13 = smov 8  }
   0xd   :  { %25 = dma.hbm_to_vmem [thread:$0]  %s203_s0, 256, %s20_s10, [#allocation4], %s175_s12, %s175_s12, %s176_s13  }
   0xe   :  { %s177_s16 = smov [#allocation6]  }
   0xf   :  { %s35_s17 = sshll.u32 %s177_s16, 4  ;;  %s36_s17 = int_to_ptr.vmem [resolvable:$true] %s35_s17 }
  0x10   :  { %s136_s18 = scalar_lea.vmem %s36_s17, 256  ;;  %p141_p6 = scmp.lt.s32.totalorder %s36_s17, %s36_s17 }
  0x11   :  { %p137_p5 = scmp.ne.s32.totalorder %s36_s17, %s136_s18  ;;  %p142_p7 = scmp.lt.s32.totalorder %s136_s18, %s136_s18 }
  0x13   :  { %p143_p8 = por %p142_p7, %p141_p6 }
  0x15   :  { %p144_p9 = pnand %p143_p8, %p137_p5 }
  0x17   :  { %147 = shalt.err (!%p144_p9)
}
  0x18   :  { %41 = dma.hbm_to_vmem [thread:$0]  %s204_s1, 256, %s36_s17, [#allocation7], %s175_s12, %s175_s12, %s176_s13  }
  0x19   :  { %168 = dma.done.wait [#allocation4], 256  }
  0x1a   :  { %169 = vsyncadd [#allocation4], 4294967040 }
  0x1b   :  { %170 = dma.done.wait [#allocation7], 256  }
  0x1c   :  { %171 = vsyncadd [#allocation7], 4294967040  ;;  %v57_v0 = vld [vmem:[#allocation3] sm:$0xff]  ;;  %v58_v1 = vld [vmem:[#allocation3 + $0x8] sm:$0xff]  ;;  %s178_s0 = smov [#allocation8]   ;;  %vm83_vm0 = vcmask 0  }
  0x1d   :  { %v59_v2 = vld [vmem:[#allocation6] sm:$0xff]  ;;  %v60_v3 = vld [vmem:[#allocation6 + $0x8] sm:$0xff]  ;;  %s91_s1 = sshll.u32 %s178_s0, 4  ;;  %s92_s1 = int_to_ptr.vmem [resolvable:$true] %s91_s1 }
  0x1e   :  { %v61_v4 = vsub.f32 %v57_v0, %v59_v2  ;;  %v62_v5 = vsub.f32 %v58_v1, %v60_v3  ;;  %s148_s22 = scalar_lea.vmem %s92_s1, 16  ;;  %s152_s23 = scalar_lea.vmem %s92_s1, 32 }
  0x1f   :  { %p149_p10 = scmp.ne.s32.totalorder %s92_s1, %s148_s22  ;;  %p153_p11 = scmp.lt.s32.totalorder %s92_s1, %s92_s1 }
  0x20   :  { %v63_v6 = vand.u32 2147483647, %v61_v4  ;;  %v64_v7 = vand.u32 2147483647, %v62_v5  ;;  %p154_p12 = scmp.lt.s32.totalorder %s152_s23, %s148_s22 }
  0x22   :  { %v66_v8 = vadd.f32 %v64_v7, %v63_v6  ;;  %p155_p13 = por %p154_p12, %p153_p11 }
  0x24   :  { %73 = vadd.xlane.f32.xlu0 %v66_v8  ;;  %p156_p0 = pnand %p155_p13, %p149_p10 }
  0xad   :  { %v74_v9 = vpop.xlane.xlu0 %73 }
  0xae   :  { %v75_v10 = vrot.slane %v74_v9, 4 }
  0xb0   :  { %v76_v11 = vadd.f32 %v75_v10, %v74_v9 }
  0xb2   :  { %v77_v12 = vrot.slane %v76_v11, 2 }
  0xb4   :  { %v78_v13 = vadd.f32 %v77_v12, %v76_v11 }
  0xb6   :  { %v79_v14 = vrot.slane %v78_v13, 1 }
  0xb8   :  { %v80_v15 = vadd.f32 %v79_v14, %v78_v13 }
  0xba   :  { %101 = vpush %v80_v15 }
  0xeb   :  { %s102_s21 = spop %101 }
  0xec   :  { %v82_v16 = vstv %s102_s21 }
  0xed   :  { %84 = vst.msk [vmem:[#allocation8] sm:$0x1] %vm83_vm0, %v82_v16 }
  0xee   :  { %159 = shalt.err (!%p156_p0)
}
  0xef   :  { %94 = dma.vmem_to_hbm [thread:$0]  %s92_s1, 16, %s205_s2, [#allocation5]  }
  0xf0   :  { %172 = dma.done.wait [#allocation5], 16  }
  0xf1   :  { %173 = vsyncadd [#allocation5], 4294967280 }
  0xf2   :  { %98 = vsyncpa [#allocation4], 1 }
  0xf3   :  { %99 = vsyncpa [#allocation7], 1 }
  0xf4   :  { %100 = vsyncpa [#allocation5], 1 }

</bundles_post_ra>
